<compile_context>
chip_gen: v6e
topology: v6e:2x2x1
jax: 0.10.0
libtpu: 0.0.40
codegen_flags: <defaults>
</compile_context>

<pallas_src>
import math

import jax
import jax.numpy as jnp
from jax.experimental import pallas as pl
from jax.experimental.pallas import tpu as pltpu

ALPHA = 0.25      # nn.PReLU() default init (single shared parameter)
BN_EPS = 1e-5


# ----------------------------------------------------------------------------
# Pallas kernels
# ----------------------------------------------------------------------------
def _prelu(z, alpha):
    return jnp.where(z >= 0.0, z, alpha * z)


def make_proj_kernel(alpha):
    """Fused Q|K|V 1x1 conv (+folded BN, +folded 1/sqrt(d) on Q) + PReLU.

    One (TM, CF) @ (CF, 3*Dp) MXU pass per row tile; each of the B*T rows is
    projected exactly once.
    """
    def kernel(x_ref, wqkv_ref, bqkv_ref, qkv_ref):
        x = x_ref[...].astype(jnp.bfloat16)              # f32 -> bf16 on-chip
        z = jnp.dot(x, wqkv_ref[...],
                    preferred_element_type=jnp.float32) + bqkv_ref[...]
        qkv_ref[...] = _prelu(z, alpha).astype(qkv_ref.dtype)      # bf16 out
    return kernel


def make_attn_kernel(alpha):
    """softmax(Q K^T) V, output 1x1 conv (+folded BN) + PReLU, f32 residual."""
    def kernel(q_ref, k_ref, v_ref, x_ref, wo_ref, bo_ref, out_ref):
        q = q_ref[0]                                     # (TQ, Dp) bf16
        k = k_ref[0]                                     # (T,  Dp) bf16
        v = v_ref[0]                                     # (T,  Dp) bf16

        # Scores; 1/sqrt(C*F//2) is already folded into the Q weights. The
        # zero-padded Dp tail contributes 0 to the contraction.
        s = jax.lax.dot_general(q, k, (((1,), (1,)), ((), ())),
                                preferred_element_type=jnp.float32)  # (TQ, T)
        e = jnp.exp(s - jnp.max(s, axis=-1, keepdims=True))
        denom = jnp.sum(e, axis=-1, keepdims=True)                   # (TQ, 1)

        # Unnormalized PV, then normalize the small (TQ, Dp) output instead of
        # the (TQ, T) probabilities; the reciprocal goes to the EUP slot.
        o = jnp.dot(e.astype(jnp.bfloat16), v,
                    preferred_element_type=jnp.float32)              # (TQ, Dp)
        o = o * pl.reciprocal(denom, approx=True)

        # Output 1x1 conv + folded BN + PReLU, residual add in exact f32.
        z = jnp.dot(o.astype(jnp.bfloat16), wo_ref[...],
                    preferred_element_type=jnp.float32) + bo_ref[...]
        z = _prelu(z, alpha)
        out_ref[0] = (z + x_ref[0]).astype(out_ref.dtype)
    return kernel


# ----------------------------------------------------------------------------
# Parameter construction / folding (glue, plain JAX)
# ----------------------------------------------------------------------------
def init_branch(key, cin, cout):
    k1, k2, k3, k4, k5, k6 = jax.random.split(key, 6)
    bound = 1.0 / math.sqrt(cin)                        # 1x1 conv fan_in = cin
    W = jax.random.uniform(k1, (cout, cin), jnp.float32, -bound, bound)
    b = jax.random.uniform(k2, (cout,), jnp.float32, -bound, bound)
    gamma = 1.0 + 0.1 * jax.random.normal(k3, (cout,), jnp.float32)
    beta = 0.1 * jax.random.normal(k4, (cout,), jnp.float32)
    mean = 0.1 * jax.random.normal(k5, (cout,), jnp.float32)
    var = 1.0 + 0.1 * jax.random.uniform(k6, (cout,), jnp.float32)
    return dict(W=W, b=b, gamma=gamma, beta=beta, mean=mean, var=var)


def fold_bn(p):
    """Fold inference-mode BN into the 1x1 conv weight / bias."""
    scale = p["gamma"] / jnp.sqrt(p["var"] + BN_EPS)
    Wf = p["W"] * scale[:, None]
    bf = (p["b"] - p["mean"]) * scale + p["beta"]
    return Wf, bf


def build_fused_weights(params, C, F, dtype=jnp.bfloat16):
    """Fold BN, kron-expand, fold 1/sqrt(d) into Q, pad D->Dp, fuse & transpose.

    NOTE: kron(W, I_F) densifies a block-diagonal matrix; fine at CF=128 but
    should be replaced by a blocked projection if C*F grows past ~512.
    """
    C2 = C // 2
    CF = C * F
    D = C2 * F
    Dp = max(128, ((D + 127) // 128) * 128)          # lane-dense padded head dim
    inv_sqrt_d = 1.0 / math.sqrt(CF // 2)            # true divisor of the module

    def branch(p, scale=1.0):
        Wf, bf = fold_bn(p)
        Wf = Wf * scale
        bf = bf * scale
        Wbig = jnp.kron(Wf, jnp.eye(F, dtype=jnp.float32))   # (cout*F, cin*F)
        bbig = jnp.repeat(bf, F)
        return Wbig, bbig

    # PReLU is positively homogeneous, so folding the positive score scale into
    # the Q conv/BN weights is exact.
    Wq, bq = branch(params["q"], inv_sqrt_d)          # (D, CF), (D,)
    Wk, bk = branch(params["k"])
    Wv, bv = branch(params["v"])
    Wo, bo = branch(params["o"])                      # (CF, D), (CF,)

    def pad_out(W, b):                                # pad output dim D -> Dp
        Wp = jnp.zeros((Dp, CF), jnp.float32).at[:D].set(W)
        bp = jnp.zeros((Dp,), jnp.float32).at[:D].set(b)
        return Wp, bp

    Wq, bq = pad_out(Wq, bq)
    Wk, bk = pad_out(Wk, bk)
    Wv, bv = pad_out(Wv, bv)

    # Fused, pre-transposed QKV weight: (CF, 3*Dp) bf16; bias (1, 3*Dp) f32.
    W_qkv = jnp.concatenate([Wq, Wk, Wv], axis=0).T.astype(dtype)
    b_qkv = jnp.concatenate([bq, bk, bv], axis=0)[None, :]

    # Output projection: pad input dim D -> Dp, pre-transpose to (Dp, CF).
    Wo_p = jnp.zeros((CF, Dp), jnp.float32).at[:, :D].set(Wo).T.astype(dtype)
    b_o = bo[None, :]                                             # (1, CF) f32

    return W_qkv, b_qkv, Wo_p, b_o, Dp


# ----------------------------------------------------------------------------
# Tiling / VMEM helpers
# ----------------------------------------------------------------------------
def _largest_tile(n, cap):
    """Largest multiple of 8 that divides n and is <= cap (n % 8 == 0)."""
    best = 8
    t = 8
    top = min(n, cap)
    while t <= top:
        if n % t == 0:
            best = t
        t += 8
    return best


def _vmem_limit(est_bytes):
    """Derive vmem_limit_bytes from the block-shape estimate, clamped to HW."""
    try:
        cap = int(pltpu.get_tpu_info().vmem_capacity_bytes)
    except Exception:
        cap = 64 << 20                   # conservative: v7x physical per-TC VMEM
    return int(min(max(est_bytes + (8 << 20), 16 << 20), int(0.9 * cap)))


# ----------------------------------------------------------------------------
# Wrappers calling pallas_call
# ----------------------------------------------------------------------------
def temporal_self_attention_flat(x_flat, params, C, F, out_dtype=jnp.float32):
    """x_flat: (B, T, C*F) f32 with d = c*F + f.  Returns (B, T, C*F).

    Use this entry point from a model already living in (B, T, C*F) layout to
    avoid NCHW <-> flat transposes around the kernels.  Pass
    out_dtype=jnp.bfloat16 if the consumer tolerates it (halves writeback).
    """
    B, T, CF = x_flat.shape
    assert CF == C * F and C % 2 == 0 and T % 8 == 0
    x_flat = x_flat.astype(jnp.float32)

    W_qkv, b_qkv, Wo_p, b_o, Dp = build_fused_weights(params, C, F)

    # ---- Pass 1: fused QKV projection; batch folded into the MXU M dim ----
    BT = B * T
    TM = _largest_tile(BT, 512)
    x_rows = x_flat.reshape(BT, CF)

    proj_vmem = (2 * (TM * CF * 4 + TM * 3 * Dp * 2)       # dbl-buffered x / out
                 + 2 * (CF * 3 * Dp * 2 + 3 * Dp * 4)      # weights / bias
                 + TM * 3 * Dp * 4)                        # f32 intermediate

    qkv = pl.pallas_call(
        make_proj_kernel(ALPHA),
        out_shape=jax.ShapeDtypeStruct((BT, 3 * Dp), jnp.bfloat16),
        grid=(BT // TM,),
        in_specs=[
            pl.BlockSpec((TM, CF), lambda i: (i, 0)),      # x rows (f32 in HBM)
            pl.BlockSpec((CF, 3 * Dp), lambda i: (0, 0)),  # fused Wqkv
            pl.BlockSpec((1, 3 * Dp), lambda i: (0, 0)),   # fused bias
        ],
        out_specs=pl.BlockSpec((TM, 3 * Dp), lambda i: (i, 0)),
        compiler_params=pltpu.CompilerParams(
            dimension_semantics=("parallel",),
            vmem_limit_bytes=_vmem_limit(proj_vmem)),
    )(x_rows, W_qkv, b_qkv).reshape(B, T, 3 * Dp)

    # ---- Pass 2: attention + output projection + residual ----
    TQ = _largest_tile(T, 256)
    if B == 1 and T // TQ == 1 and TQ % 16 == 0:
        TQ //= 2                 # keep both v7x TensorCores busy at B == 1
    NQ = T // TQ

    attn_vmem = (2 * (TQ * Dp * 2 + 2 * T * Dp * 2          # dbl-buffered Q,K,V
                      + TQ * CF * 4 + TQ * CF * 4)          # x tile + out tile
                 + 2 * (Dp * CF * 2 + CF * 4)               # output weights/bias
                 + 2 * TQ * T * 4                           # scores + exp (f32)
                 + TQ * Dp * 4 + 2 * TQ * CF * 4)           # PV / proj intermediates

    const = lambda shape: pl.BlockSpec(shape, lambda b, qi: (0,) * len(shape))

    out_flat = pl.pallas_call(
        make_attn_kernel(ALPHA),
        out_shape=jax.ShapeDtypeStruct((B, T, CF), out_dtype),
        grid=(B, NQ),
        in_specs=[
            pl.BlockSpec((1, TQ, Dp), lambda b, qi: (b, qi, 0)),   # Q tile
            pl.BlockSpec((1, T, Dp), lambda b, qi: (b, 0, 1)),     # K (once per b)
            pl.BlockSpec((1, T, Dp), lambda b, qi: (b, 0, 2)),     # V (once per b)
            pl.BlockSpec((1, TQ, CF), lambda b, qi: (b, qi, 0)),   # x tile (f32 residual)
            const((Dp, CF)),                                        # W_out
            const((1, CF)),                                         # b_out
        ],
        out_specs=pl.BlockSpec((1, TQ, CF), lambda b, qi: (b, qi, 0)),
        compiler_params=pltpu.CompilerParams(
            dimension_semantics=("parallel", "parallel"),
            vmem_limit_bytes=_vmem_limit(attn_vmem)),
    )(qkv, qkv, qkv, x_flat, Wo_p, b_o)

    return out_flat


def temporal_self_attention(x, params):
    """NCHW interface matching the PyTorch module: x (B, C, T, F) -> same."""
    B, C, T, F = x.shape
    # In a real model keep (B, T, C*F) layout and call the _flat entry directly.
    x_flat = jnp.transpose(x, (0, 2, 1, 3)).reshape(B, T, C * F)
    out_flat = temporal_self_attention_flat(x_flat, params, C, F)
    return jnp.transpose(out_flat.reshape(B, T, C, F), (0, 2, 1, 3))


# ----------------------------------------------------------------------------
# Pure-JAX f32 reference mirroring the PyTorch forward (inference-mode BN)
# ----------------------------------------------------------------------------
def reference_forward(x, params):
    B, C, T, F = x.shape
    C2 = C // 2

    def cbp(inp, p):
        y = jnp.einsum("bctf,oc->botf", inp, p["W"]) + p["b"][None, :, None, None]
        inv = p["gamma"] / jnp.sqrt(p["var"] + BN_EPS)
        y = (y - p["mean"][None, :, None, None]) * inv[None, :, None, None] \
            + p["beta"][None, :, None, None]
        return jnp.where(y >= 0, y, ALPHA * y)

    q = jnp.transpose(cbp(x, params["q"]), (0, 2, 1, 3)).reshape(B, T, C2 * F)
    k = jnp.transpose(cbp(x, params["k"]), (0, 2, 1, 3)).reshape(B, T, C2 * F)
    v = jnp.transpose(cbp(x, params["v"]), (0, 2, 1, 3)).reshape(B, T, C2 * F)

    s = jnp.einsum("btd,bsd->bts", q, k) / math.sqrt(C * F // 2)
    p_attn = jax.nn.softmax(s, axis=-1)
    o = jnp.einsum("bts,bsd->btd", p_attn, v)
    logits = jnp.transpose(o.reshape(B, T, C2, F), (0, 2, 1, 3))
    return cbp(logits, params["o"]) + x


# ----------------------------------------------------------------------------
if __name__ == "__main__":
    B, C, T, F = 2, 8, 16, 16          # num_channels = 8 (must be even)
    C2 = C // 2

    key = jax.random.PRNGKey(0)
    kx, kq, kk, kv, ko = jax.random.split(key, 5)

    x = jax.random.normal(kx, (B, C, T, F), jnp.float32)
    params = {
        "q": init_branch(kq, C, C2),
        "k": init_branch(kk, C, C2),
        "v": init_branch(kv, C, C2),
        "o": init_branch(ko, C2, C),
    }

    out = jax.block_until_ready(temporal_self_attention(x, params))
    ref = jax.block_until_ready(reference_forward(x, params))

    assert out.shape == (B, C, T, F), out.shape
    # Tolerance accounts for bf16 matmul inputs (f32 accumulation) and the
    # approximate softmax reciprocal vs. the pure-f32 reference.
    if not jnp.allclose(out, ref, rtol=5e-2, atol=5e-2):
        max_err = jnp.max(jnp.abs(out - ref))
        raise AssertionError(f"mismatch vs reference, max abs err = {max_err}")

    print("KERNEL_OK")
</pallas_src>

<mosaic_0001>
module attributes {stable_mosaic.version = 11 : i64} {
  func.func @kernel(%arg0: i32, %arg1: memref<32x128xf32, #tpu.memory_space<vmem>>, %arg2: memref<128x384xbf16, #tpu.memory_space<vmem>>, %arg3: memref<1x384xf32, #tpu.memory_space<vmem>>, %arg4: memref<32x384xbf16, #tpu.memory_space<vmem>>) attributes {dimension_semantics = [#tpu.dimension_semantics<parallel>], iteration_bounds = array<i64: 1>, scalar_prefetch = 0 : i64, scratch_operands = 0 : i64, tpu.core_type = #tpu.core_type<tc>, window_params = [{transform_indices = @transform_0, window_bounds = array<i64: 32, 128>}, {pipeline_mode = #tpu.pipeline_mode<synchronous>, transform_indices = @transform_1, window_bounds = array<i64: 128, 384>}, {pipeline_mode = #tpu.pipeline_mode<synchronous>, transform_indices = @transform_2, window_bounds = array<i64: 1, 384>}, {transform_indices = @transform_3, window_bounds = array<i64: 32, 384>}]} {
    %c0 = arith.constant 0 : index
    %c0_0 = arith.constant 0 : index
    %0 = vector.load %arg1[%c0, %c0_0] : memref<32x128xf32, #tpu.memory_space<vmem>>, vector<32x128xf32>
    %1 = arith.truncf %0 : vector<32x128xf32> to vector<32x128xbf16>
    %c0_1 = arith.constant 0 : index
    %c0_2 = arith.constant 0 : index
    %2 = vector.load %arg2[%c0_1, %c0_2] : memref<128x384xbf16, #tpu.memory_space<vmem>>, vector<128x384xbf16>
    %cst = arith.constant dense<0.000000e+00> : vector<32x384xf32>
    %3 = tpu.matmul %1, %2, %cst {dimension_numbers = #tpu.dot_dimension_numbers<[1], [0], [0], [1], [0, 0, 1, 1], [], []>} : vector<32x128xbf16>, vector<128x384xbf16>, vector<32x384xf32> -> vector<32x384xf32>
    %c0_3 = arith.constant 0 : index
    %c0_4 = arith.constant 0 : index
    %4 = vector.load %arg3[%c0_3, %c0_4] : memref<1x384xf32, #tpu.memory_space<vmem>>, vector<1x384xf32>
    %5 = vector.broadcast %4 : vector<1x384xf32> to vector<32x384xf32>
    %6 = arith.addf %3, %5 : vector<32x384xf32>
    %cst_5 = arith.constant 0.000000e+00 : f32
    %7 = vector.broadcast %cst_5 : f32 to vector<32x384xf32>
    %8 = arith.cmpf oge, %6, %7 : vector<32x384xf32>
    %cst_6 = arith.constant 2.500000e-01 : f32
    %9 = vector.broadcast %cst_6 : f32 to vector<32x384xf32>
    %10 = arith.mulf %9, %6 : vector<32x384xf32>
    %11 = arith.select %8, %6, %10 : vector<32x384xi1>, vector<32x384xf32>
    %12 = arith.truncf %11 : vector<32x384xf32> to vector<32x384xbf16>
    %c0_7 = arith.constant 0 : index
    %c0_8 = arith.constant 0 : index
    %13 = vector.load %arg4[%c0_7, %c0_8] : memref<32x384xbf16, #tpu.memory_space<vmem>>, vector<32x384xbf16>
    tpu.vector_store %arg4[%c0_7, %c0_8], %12 {strides = array<i32>} : memref<32x384xbf16, #tpu.memory_space<vmem>>, vector<32x384xbf16>,
    return
  }
  func.func @transform_0(%arg0: i32) -> (i32, i32) {
    %c0_i32 = arith.constant 0 : i32
    %c0_i32_0 = arith.constant 0 : i32
    return %arg0, %c0_i32 : i32, i32
  }
  func.func @transform_1(%arg0: i32) -> (i32, i32) {
    %c0_i32 = arith.constant 0 : i32
    %c0_i32_0 = arith.constant 0 : i32
    %c0_i32_1 = arith.constant 0 : i32
    return %c0_i32, %c0_i32_0 : i32, i32
  }
  func.func @transform_2(%arg0: i32) -> (i32, i32) {
    %c0_i32 = arith.constant 0 : i32
    %c0_i32_0 = arith.constant 0 : i32
    %c0_i32_1 = arith.constant 0 : i32
    return %c0_i32, %c0_i32_0 : i32, i32
  }
  func.func @transform_3(%arg0: i32) -> (i32, i32) {
    %c0_i32 = arith.constant 0 : i32
    %c0_i32_0 = arith.constant 0 : i32
    return %arg0, %c0_i32 : i32, i32
  }
}

</mosaic_0001>

<bundles_post_ra>
// kernel: tpu_custom_call.1
= control target key start
LH: loop header
LB: loop body
LE: loop exit
PB: predicated region body
PF: predicated region fallthrough
CT: control target
= control target key end

     0   :  { %8 = vsyncpa [#allocation3], 0  ;;  %s655_s0 = inlined_call_operand.hbm [shape: f32[32,128], index: 0, kind: input, shape index: {}]   ;;  %s656_s1 = inlined_call_operand.hbm [shape: bf16[128,384], index: 1, kind: input, shape index: {}]   ;;  %s657_s2 = inlined_call_operand.vmem [shape: f32[1,384], index: 2, kind: input, shape index: {}]   ;;  %s658_s3 = inlined_call_operand.hbm [shape: bf16[32,384], index: 3, kind: output, shape index: {}]  }
   0x1   :  { %9 = vsyncpa [#allocation6], 0 }
   0x2   :  { %10 = vsyncpa [#allocation4], 0  ;;  %s607_s12 = smov [#allocation2]  }
   0x3   :  { %s16_s13 = sshll.u32 %s607_s12, 4  ;;  %s17_s13 = int_to_ptr.vmem [resolvable:$true] %s16_s13 }
   0x4   :  { %s549_s14 = scalar_lea.vmem %s17_s13, 512  ;;  %p554_p1 = scmp.lt.s32.totalorder %s17_s13, %s17_s13 }
   0x5   :  { %p550_p0 = scmp.ne.s32.totalorder %s17_s13, %s549_s14  ;;  %p555_p2 = scmp.lt.s32.totalorder %s549_s14, %s549_s14 }
   0x7   :  { %p556_p3 = por %p555_p2, %p554_p1 }
   0x9   :  { %p557_p4 = pnand %p556_p3, %p550_p0 }
   0xb   :  { %560 = shalt.err (!%p557_p4)
}
   0xc   :  { %s608_s15 = smov 128   ;;  %s609_s16 = smov 8  }
   0xd   :  { %22 = dma.hbm_to_vmem [thread:$0]  %s655_s0, 512, %s17_s13, [#allocation3], %s608_s15, %s608_s15, %s609_s16  }
   0xe   :  { %s610_s19 = smov [#allocation5]  }
   0xf   :  { %s28_s20 = sshll.u32 %s610_s19, 4  ;;  %s29_s20 = int_to_ptr.vmem [resolvable:$true] %s28_s20 }
  0x10   :  { %s569_s21 = scalar_lea.vmem %s29_s20, 3072  ;;  %p574_p6 = scmp.lt.s32.totalorder %s29_s20, %s29_s20 }
  0x11   :  { %p570_p5 = scmp.ne.s32.totalorder %s29_s20, %s569_s21  ;;  %p575_p7 = scmp.lt.s32.totalorder %s569_s21, %s569_s21 }
  0x13   :  { %p576_p8 = por %p575_p7, %p574_p6 }
  0x15   :  { %p577_p9 = pnand %p576_p8, %p570_p5 }
  0x17   :  { %580 = shalt.err (!%p577_p9)
}
  0x18   :  { %s611_s22 = smov 192   ;;  %s612_s23 = smov 12  }
  0x19   :  { %34 = dma.hbm_to_vmem [thread:$0]  %s656_s1, 3072, %s29_s20, [#allocation6], %s611_s22, %s611_s22, %s612_s23  }
  0x1a   :  { %601 = dma.done.wait [#allocation3], 512  }
  0x1b   :  { %602 = vsyncadd [#allocation3], 4294966784 }
  0x1c   :  { %603 = dma.done.wait [#allocation6], 3072  }
  0x1d   :  { %604 = vsyncadd [#allocation6], 4294964224  ;;  %v613_v0 = vmov 0   ;;  %v509_v1 = vld [vmem:[#allocation5 + $0xac] ss:$12 sps:$4 sm:$0xff]   ;;  %v44_v18 = vld [vmem:[#allocation2] sm:$0xff]  ;;  %v84_v31 = vlaneseq }
  0x1e   :  { %259 = vmatprep.mubr.bf16.mxu0 %v613_v0  ;;  %v511_v2 = vld [vmem:[#allocation5 + $0xb0] ss:$12 sps:$4 sm:$0xff]   ;;  %227 = vmatprep.subr.bf16.mxu0 %v509_v1  ;;  %v512_v3 = vld [vmem:[#allocation5 + $0xa8] ss:$12 sps:$4 sm:$0xff]   ;;  %v515_v5 = vld [vmem:[#allocation5 + $0x98] ss:$12 sps:$4 sm:$0xff]  }
  0x1f   :  { %481 = vmatprep.subr.bf16.mxu1 %v511_v2  ;;  %v513_v4 = vld [vmem:[#allocation5 + $0x94] ss:$12 sps:$4 sm:$0xff]   ;;  %228 = vmatpush1.bf16.msra.mxu0 %v512_v3  ;;  %v516_v6 = vld [vmem:[#allocation5 + $0x90] ss:$12 sps:$4 sm:$0xff]   ;;  %v520_v9 = vld [vmem:[#allocation5 + $0x78] ss:$12 sps:$4 sm:$0xff]  }
  0x20   :  { %482 = vmatpush3.bf16.msra.mxu1 %v511_v2  ;;  %229 = vmatprep.subr.bf16.mxu0 %v513_v4  ;;  %v517_v7 = vld [vmem:[#allocation5 + $0x7c] ss:$12 sps:$4 sm:$0xff]   ;;  %v519_v8 = vld [vmem:[#allocation5 + $0x80] ss:$12 sps:$4 sm:$0xff]   ;;  %v521_v10 = vld [vmem:[#allocation5 + $0x64] ss:$12 sps:$4 sm:$0xff]  }
  0x21   :  { %483 = vmatprep.subr.bf16.mxu1 %v515_v5  ;;  %v523_v11 = vld [vmem:[#allocation5 + $0x68] ss:$12 sps:$4 sm:$0xff]   ;;  %v524_v12 = vld [vmem:[#allocation5 + $0x60] ss:$12 sps:$4 sm:$0xff]   ;;  %v527_v14 = vld [vmem:[#allocation5 + $0x50] ss:$12 sps:$4 sm:$0xff]  }
  0x22   :  { %v525_v13 = vld [vmem:[#allocation5 + $0x4c] ss:$12 sps:$4 sm:$0xff]   ;;  %v528_v15 = vld [vmem:[#allocation5 + $0x48] ss:$12 sps:$4 sm:$0xff]   ;;  %v532_v20 = vld [vmem:[#allocation5 + $0x30] ss:$12 sps:$4 sm:$0xff]  }
  0x23   :  { %230 = vmatpush1.bf16.msra.mxu0 %v516_v6  ;;  %v529_v16 = vld [vmem:[#allocation5 + $0x34] ss:$12 sps:$4 sm:$0xff]   ;;  %v531_v17 = vld [vmem:[#allocation5 + $0x38] ss:$12 sps:$4 sm:$0xff]   ;;  %v45_v19 = vld [vmem:[#allocation2 + $0x8] sm:$0xff]  ;;  %v85_v32 = vshrl.u32 %v84_v31, 7 }
  0x24   :  { %484 = vmatpush3.bf16.msra.mxu1 %v515_v5  ;;  %231 = vmatprep.subr.bf16.mxu0 %v517_v7  ;;  %v48_v21 = vpack.c.bf16 %v45_v19, %v44_v18  ;;  %v533_v22 = vld [vmem:[#allocation5 + $0x1c] ss:$12 sps:$4 sm:$0xff]   ;;  %v535_v23 = vld [vmem:[#allocation5 + $0x20] ss:$12 sps:$4 sm:$0xff]   ;;  %v536_v24 = vld [vmem:[#allocation5 + $0x18] ss:$12 sps:$4 sm:$0xff]  }
  0x25   :  { %485 = vmatprep.subr.bf16.mxu1 %v519_v8  ;;  %v537_v25 = vld [vmem:[#allocation5 + $0x4] ss:$12 sps:$4 sm:$0xff]   ;;  %v539_v26 = vld [vmem:[#allocation5 + $0x8] ss:$12 sps:$4 sm:$0xff]   ;;  %v540_v27 = vld [vmem:[#allocation5] ss:$12 sps:$4 sm:$0xff]  }
  0x26   :  { %497 = vmatprep.mubr.bf16.mxu1 %v48_v21  ;;  %v46_v28 = vld [vmem:[#allocation2 + $0x10] sm:$0xff]  ;;  %v47_v29 = vld [vmem:[#allocation2 + $0x18] sm:$0xff]  ;;  %v86_v33 = vsub.s32 0, %v85_v32  ;;  %v94_v34 = vsub.s32 2, %v85_v32  ;;  %v82_v35 = vld [vmem:[%s657_s2] sm:$0x7] }
  0x27   :  { %232 = vmatpush1.bf16.msra.mxu0 %v520_v9  ;;  %v49_v30 = vpack.c.bf16 %v47_v29, %v46_v28  ;;  %v90_v36 = vsub.s32 1, %v85_v32  ;;  %s614_s2 = smov [#allocation7]  }
  0x28   :  { %486 = vmatpush3.bf16.msra.mxu1 %v519_v8  ;;  %233 = vmatprep.subr.bf16.mxu0 %v521_v10  ;;  %v87_v37 = vrot.slane %v82_v35, %v86_v33  ;;  %v95_v38 = vrot.slane %v82_v35, %v94_v34  ;;  %s418_s26 = sshll.u32 %s614_s2, 4  ;;  %s419_s26 = int_to_ptr.vmem [resolvable:$true] %s418_s26 }
  0x29   :  { %487 = vmatprep.subr.bf16.mxu1 %v523_v11  ;;  %v91_v41 = vrot.slane %v82_v35, %v90_v36  ;;  %s581_s27 = scalar_lea.vmem %s419_s26, 768  ;;  %p586_p11 = scmp.lt.s32.totalorder %s419_s26, %s419_s26 }
  0x2a   :  { %p582_p10 = scmp.ne.s32.totalorder %s419_s26, %s581_s27  ;;  %p587_p12 = scmp.lt.s32.totalorder %s581_s27, %s581_s27 }
  0x2b   :  { %234 = vmatpush1.bf16.msra.mxu0 %v524_v12 }
  0x2c   :  { %488 = vmatpush3.bf16.msra.mxu1 %v523_v11  ;;  %235 = vmatprep.subr.bf16.mxu0 %v525_v13  ;;  %p588_p13 = por %p587_p12, %p586_p11 }
  0x2d   :  { %489 = vmatprep.subr.bf16.mxu1 %v527_v14 }
  0x2e   :  { %p589_p0 = pnand %p588_p13, %p582_p10 }
  0x2f   :  { %236 = vmatpush1.bf16.msra.mxu0 %v528_v15 }
  0x30   :  { %490 = vmatpush3.bf16.msra.mxu1 %v527_v14  ;;  %237 = vmatprep.subr.bf16.mxu0 %v529_v16 }
  0x31   :  { %491 = vmatprep.subr.bf16.mxu1 %v531_v17 }
  0x33   :  { %238 = vmatpush1.bf16.msra.mxu0 %v532_v20 }
  0x34   :  { %492 = vmatpush3.bf16.msra.mxu1 %v531_v17  ;;  %239 = vmatprep.subr.bf16.mxu0 %v533_v22 }
  0x35   :  { %493 = vmatprep.subr.bf16.mxu1 %v535_v23 }
  0x37   :  { %240 = vmatpush1.bf16.msra.mxu0 %v536_v24 }
  0x38   :  { %494 = vmatpush3.bf16.msra.mxu1 %v535_v23  ;;  %241 = vmatprep.subr.bf16.mxu0 %v537_v25 }
  0x39   :  { %495 = vmatprep.subr.bf16.mxu1 %v539_v26 }
  0x3b   :  { %242 = vmatpush1.bf16.msra.mxu0 %v540_v27 }
  0x3c   :  { %496 = vmatpush3.bf16.msra.mxu1 %v539_v26 }
  0x3e   :  { %260 = vmatmul.mubr.bf16.vlgmr.msra.gmra.mxu0 %v48_v21 }
  0x3f   :  { %498 = vmatmul.mubr.bf16.vlgmr.msra.gmra.mxu1 %v49_v30  ;;  %269 = vmatprep.mubr.bf16.mxu0 %v613_v0 }
  0x46   :  { %270 = vmatmul.mubr.bf16.gmra.mxu0 %v49_v30 }
  0xfe   :  { %v261_v39 = vpop.f32.mrf.mxu0 }
  0xff   :  { %v499_v40 = vpop.f32.mrf.mxu1  ;;  %v262_v42 = vadd.f32 %v261_v39, %v87_v37 }
 0x100   :  { %v323_v43 = vadd.f32 %v499_v40, %v95_v38  ;;  %v263_v44 = vpop.f32.mrf.mxu0 }
 0x101   :  { %v314_v45 = vpop.f32.mrf.mxu1  ;;  %v341_v46 = vmul.f32 0.25, %v262_v42  ;;  %vm329_vm1 = vcmp.ge.f32.partialorder %v262_v42, 0.0  ;;  %v264_v48 = vadd.f32 %v263_v44, %v91_v41 }
 0x102   :  { %vm337_vm0 = vcmp.ge.f32.partialorder %v323_v43, 0.0  ;;  %v349_v47 = vmul.f32 0.25, %v323_v43  ;;  %v315_v49 = vadd.f32 %v314_v45, %v95_v38  ;;  %v265_v50 = vpop.f32.mrf.mxu0 }
 0x103   :  { %v500_v51 = vpop.f32.mrf.mxu1  ;;  %v266_v53 = vadd.f32 %v265_v50, %v87_v37  ;;  %vm330_vm2 = vcmp.ge.f32.partialorder %v264_v48, 0.0  ;;  %v342_v56 = vmul.f32 0.25, %v264_v48  ;;  %v353_v59 = vsel %vm329_vm1, %v262_v42, %v341_v46 }
 0x104   :  { %v361_v52 = vsel %vm337_vm0, %v323_v43, %v349_v47  ;;  %v326_v54 = vadd.f32 %v500_v51, %v95_v38  ;;  %vm331_vm3 = vcmp.ge.f32.partialorder %v315_v49, 0.0  ;;  %v267_v57 = vpop.f32.mrf.mxu0  ;;  %v343_v60 = vmul.f32 0.25, %v315_v49 }
 0x105   :  { %v468_v55 = vpack.c.bf16 %v361_v52, %v361_v52  ;;  %v317_v58 = vpop.f32.mrf.mxu1  ;;  %v344_v61 = vmul.f32 0.25, %v266_v53  ;;  %v354_v62 = vsel %vm330_vm2, %v264_v48, %v342_v56  ;;  %v268_v0 = vadd.f32 %v267_v57, %v91_v41 }
 0x106   :  { %vm340_vm4 = vcmp.ge.f32.partialorder %v326_v54, 0.0  ;;  %v352_v63 = vmul.f32 0.25, %v326_v54  ;;  %v318_v1 = vadd.f32 %v317_v58, %v95_v38  ;;  %v271_v2 = vpop.f32.mrf.mxu0  ;;  %v463_v3 = vpack.c.bf16 %v354_v62, %v353_v59 }
 0x107   :  { %410 = vst [vmem:[#allocation7 + $0x20] sm:$0xf] %v468_v55  ;;  %v355_v4 = vsel %vm331_vm3, %v315_v49, %v343_v60  ;;  %vm332_vm5 = vcmp.ge.f32.partialorder %v266_v53, 0.0  ;;  %v272_v5 = vadd.f32 %v271_v2, %v87_v37  ;;  %vm333_vm6 = vcmp.ge.f32.partialorder %v268_v0, 0.0 }
 0x108   :  { %v464_v6 = vpack.c.bf16 %v355_v4, %v355_v4  ;;  %v364_v7 = vsel %vm340_vm4, %v326_v54, %v352_v63  ;;  %v345_v8 = vmul.f32 0.25, %v268_v0  ;;  %v273_v9 = vpop.f32.mrf.mxu0  ;;  %405 = vst [vmem:[#allocation7] sm:$0xff] %v463_v3  ;;  %vm334_vm7 = vcmp.ge.f32.partialorder %v318_v1, 0.0 }
 0x109   :  { %v470_v10 = vpack.c.bf16 %v364_v7, %v364_v7  ;;  %v346_v11 = vmul.f32 0.25, %v318_v1  ;;  %v356_v12 = vsel %vm332_vm5, %v266_v53, %v344_v61  ;;  %v347_v14 = vmul.f32 0.25, %v272_v5 }
 0x10a   :  { %406 = vst [vmem:[#allocation7 + $0x8] sm:$0xf] %v464_v6  ;;  %v357_v13 = vsel %vm333_vm6, %v268_v0, %v345_v8  ;;  %v274_v15 = vadd.f32 %v273_v9, %v91_v41  ;;  %v275_v16 = vpop.f32.mrf.mxu0  ;;  %vm335_vm8 = vcmp.ge.f32.partialorder %v272_v5, 0.0 }
 0x10b   :  { %412 = vst [vmem:[#allocation7 + $0x2c] sm:$0xf] %v470_v10  ;;  %v465_v17 = vpack.c.bf16 %v357_v13, %v356_v12  ;;  %v358_v18 = vsel %vm334_vm7, %v318_v1, %v346_v11  ;;  %v276_v19 = vadd.f32 %v275_v16, %v87_v37  ;;  %v359_v25 = vsel %vm335_vm8, %v272_v5, %v347_v14 }
 0x10c   :  { %v466_v20 = vpack.c.bf16 %v358_v18, %v358_v18  ;;  %vm336_vm9 = vcmp.ge.f32.partialorder %v274_v15, 0.0  ;;  %v348_v21 = vmul.f32 0.25, %v274_v15  ;;  %v277_v22 = vpop.f32.mrf.mxu0 }
 0x10d   :  { %407 = vst [vmem:[#allocation7 + $0xc] sm:$0xff] %v465_v17  ;;  %v350_v23 = vmul.f32 0.25, %v276_v19  ;;  %v278_v24 = vadd.f32 %v277_v22, %v91_v41  ;;  %vm338_vm10 = vcmp.ge.f32.partialorder %v276_v19, 0.0 }
 0x10e   :  { %408 = vst [vmem:[#allocation7 + $0x14] sm:$0xf] %v466_v20  ;;  %v360_v26 = vsel %vm336_vm9, %v274_v15, %v348_v21 }
 0x10f   :  { %v467_v27 = vpack.c.bf16 %v360_v26, %v359_v25  ;;  %vm339_vm11 = vcmp.ge.f32.partialorder %v278_v24, 0.0  ;;  %v351_v28 = vmul.f32 0.25, %v278_v24  ;;  %v362_v29 = vsel %vm338_vm10, %v276_v19, %v350_v23 }
 0x111   :  { %409 = vst [vmem:[#allocation7 + $0x18] sm:$0xff] %v467_v27  ;;  %v363_v30 = vsel %vm339_vm11, %v278_v24, %v351_v28 }
 0x112   :  { %v469_v31 = vpack.c.bf16 %v363_v30, %v362_v29 }
 0x114   :  { %411 = vst [vmem:[#allocation7 + $0x24] sm:$0xff] %v469_v31 }
 0x115   :  { %592 = shalt.err (!%p589_p0)
}
 0x116   :  { %424 = dma.vmem_to_hbm [thread:$0]  %s419_s26, 768, %s658_s3, [#allocation4], %s611_s22, %s611_s22, %s612_s23  }
 0x117   :  { %605 = dma.done.wait [#allocation4], 768  }
 0x118   :  { %606 = vsyncadd [#allocation4], 4294966528 }
 0x119   :  { %428 = vsyncpa [#allocation3], 1 }
 0x11a   :  { %429 = vsyncpa [#allocation6], 1 }
 0x11b   :  { %430 = vsyncpa [#allocation4], 1 }

</bundles_post_ra>
